<compile_context>
chip_gen: v7x
topology: tpu7x:2x2x1
jax: 0.10.0
libtpu: 0.0.40
codegen_flags: <defaults>
</compile_context>

<pallas_src>
import functools

import jax
import jax.numpy as jnp
from jax import lax
from jax.experimental import pallas as pl
from jax.experimental.pallas import tpu as pltpu

LANES = 128        # class dim padded to one lane tile (logits + packed loss lane)
ROW_TILE = 16      # bf16 packs 16 sublanes/vreg -> keep row tiles multiples of 16


def _round_up(n, m):
    return (n + m - 1) // m * m


def _vmem_ceiling_bytes():
    """Physical-VMEM-aware ceiling for vmem_limit_bytes.

    The 32 MiB fallback is safe on every generation (v5e/v6e: 128 MiB
    physical, v7x: 64 MiB physical / 32 MiB scoped default); when the
    hardware query works, v5e/v6e get a larger ceiling so batch tiles grow.
    """
    try:
        cap = int(getattr(pltpu.get_tpu_info(), "vmem_capacity_bytes", 0))
        if cap > 0:
            return min(cap // 2, 96 << 20)
    except Exception:
        pass
    return 32 << 20


def _pick_batch_tile(batch, tile_bytes_fn, budget_bytes, cap=2048):
    """Largest multiple-of-16 batch tile whose working set fits the budget.

    Capped near batch/2 so the batch grid has >= 2 steps when the batch allows
    it (keeps both v7x TensorCores busy under dimension_semantics=parallel).
    For tiny batches the block simply covers the full batch extent.
    """
    two_step_cap = _round_up(max(1, -(-batch // 2)), ROW_TILE)
    tb = max(ROW_TILE, min(cap, two_step_cap) // ROW_TILE * ROW_TILE)
    while tb > ROW_TILE and tile_bytes_fn(tb) > budget_bytes:
        tb = max(ROW_TILE, (tb // 2) // ROW_TILE * ROW_TILE)
    if batch <= tb:
        return batch          # one full-extent block; no partial-block handling
    return tb


def _ce_pack(logits, y, num_classes, out_dtype):
    """CrossEntropy(reduction='none') epilogue + lane-dense packing.

    logits: [TB, 128] f32; padded class columns carry bias -1e30 so they drop
    out of the max / logsumexp.  Returns a [TB, 128] slab with columns
    [0, num_classes) = logits and column num_classes = per-example loss.
    """
    m = jnp.max(logits, axis=-1, keepdims=True)                        # [TB, 1]
    lse = m + jnp.log(jnp.sum(jnp.exp(logits - m), axis=-1, keepdims=True))
    col = lax.broadcasted_iota(jnp.int32, logits.shape, 1)             # [TB, 128]
    picked = jnp.sum(jnp.where(col == y, logits, 0.0), axis=-1, keepdims=True)
    loss = lse - picked                                                # [TB, 1]
    return jnp.where(col == num_classes, loss, logits).astype(out_dtype)


def _kernel_single(x_ref, w_ref, b_ref, y_ref, out_ref, *, num_classes):
    # Normalization already folded into (W', b'):  logits = x @ W' + b'.
    # x arrives f32 from HBM; downcast to bf16 on the tile (hidden under DMA).
    logits = jnp.dot(x_ref[...].astype(jnp.bfloat16), w_ref[...],
                     preferred_element_type=jnp.float32) + b_ref[...]   # [TB,128] f32
    out_ref[...] = _ce_pack(logits, y_ref[...], num_classes, out_ref.dtype)


def _kernel_ktiled(x_ref, w_ref, b_ref, y_ref, out_ref, acc_ref, *, num_classes):
    k = pl.program_id(1)

    @pl.when(k == 0)
    def _():
        acc_ref[...] = jnp.zeros_like(acc_ref)

    acc_ref[...] += jnp.dot(x_ref[...].astype(jnp.bfloat16), w_ref[...],
                            preferred_element_type=jnp.float32)

    @pl.when(k == pl.num_programs(1) - 1)
    def _():
        logits = acc_ref[...] + b_ref[...]
        out_ref[...] = _ce_pack(logits, y_ref[...], num_classes, out_ref.dtype)


def top_level_model_wrapper_forward(x_nchw, y, mean_c, std_c, w, b):
    """Wrapper forward pass.  Returns dict(prediction=[B, N], loss=[B])."""
    B, C, H, W = x_nchw.shape
    D = C * H * W
    N = w.shape[1]
    NP = LANES
    assert N + 1 <= NP, "num_classes + loss lane must fit in one 128-lane tile"

    # ---- fold normalization into the classifier (weight-sized; cheap) ----
    mean_d = jnp.repeat(mean_c.astype(jnp.float32), H * W)              # [D]
    istd_d = jnp.repeat(1.0 / std_c.astype(jnp.float32), H * W)         # [D]
    w_f32 = w.astype(jnp.float32)
    w_fold = istd_d[:, None] * w_f32                                    # [D, N]
    b_fold = b.astype(jnp.float32) - (mean_d * istd_d) @ w_f32          # [N]

    # class dim padded to 128 lanes; padded columns get bias -1e30 so they
    # vanish from the max / logsumexp.
    w_pad = jnp.zeros((D, NP), jnp.bfloat16).at[:, :N].set(w_fold.astype(jnp.bfloat16))
    b_pad = jnp.full((1, NP), -1e30, jnp.float32).at[0, :N].set(b_fold)

    # x / y enter the kernel un-materialized: reshape only (f32 stays in HBM).
    x2d = x_nchw.reshape(B, D)
    y2d = y.astype(jnp.int32).reshape(B, 1)

    ceiling = _vmem_ceiling_bytes()
    budget = (ceiling * 3) // 4

    def _single_bytes(tb):
        # double-buffered f32 x tile + double-buffered resident bf16 W'
        # (Pallas keeps 2 buffers even for a constant index_map) + bias + y
        # tile + double-buffered bf16 packed-output tile
        return (2 * tb * D * 4 + 2 * D * NP * 2 + 2 * NP * 4
                + 2 * tb * 4 + 2 * tb * NP * 2)

    # Single-K-block path whenever a reasonable batch tile fits VMEM;
    # otherwise tile the reduction dim (large flattened D, e.g. ImageNet).
    use_ktile = (D % LANES == 0) and (_single_bytes(64) > budget)

    if not use_ktile:
        # TODO(synk): a D-padded K-tiled fallback would be needed if D were
        # both huge and not a multiple of 128; image-shaped inputs never hit it.
        TB = _pick_batch_tile(B, _single_bytes, budget)
        need = _single_bytes(TB)
        vmem_limit = int(min(max(need * 3 // 2, 16 << 20), ceiling))
        assert need <= vmem_limit, (need, vmem_limit)

        out = pl.pallas_call(
            functools.partial(_kernel_single, num_classes=N),
            out_shape=jax.ShapeDtypeStruct((B, NP), jnp.bfloat16),
            grid=(pl.cdiv(B, TB),),
            in_specs=[
                pl.BlockSpec((TB, D), lambda i: (i, 0)),     # x:  streamed over batch
                pl.BlockSpec((D, NP), lambda i: (0, 0)),     # W': resident across grid
                pl.BlockSpec((1, NP), lambda i: (0, 0)),     # b': resident
                pl.BlockSpec((TB, 1), lambda i: (i, 0)),     # y:  streamed over batch
            ],
            out_specs=pl.BlockSpec((TB, NP), lambda i: (i, 0)),
            compiler_params=pltpu.CompilerParams(
                dimension_semantics=("parallel",),
                vmem_limit_bytes=vmem_limit),
        )(x2d, w_pad, b_pad, y2d)
    else:
        # K-reduction path: largest multiple-of-128 tile that divides D, so no
        # padding of x along D is ever required.
        TK = LANES
        for cand in range(4096, LANES - 1, -LANES):
            if D % cand == 0:
                TK = cand
                break

        def _ktile_bytes(tb):
            return (2 * tb * TK * 4 + 2 * TK * NP * 2 + 2 * NP * 4
                    + 2 * tb * 4 + tb * NP * 4 + 2 * tb * NP * 2)

        TB = _pick_batch_tile(B, _ktile_bytes, budget)
        need = _ktile_bytes(TB)
        vmem_limit = int(min(max(need * 3 // 2, 16 << 20), ceiling))
        assert need <= vmem_limit, (need, vmem_limit)

        out = pl.pallas_call(
            functools.partial(_kernel_ktiled, num_classes=N),
            out_shape=jax.ShapeDtypeStruct((B, NP), jnp.bfloat16),
            grid=(pl.cdiv(B, TB), D // TK),                  # reduction axis last
            in_specs=[
                pl.BlockSpec((TB, TK), lambda i, k: (i, k)),
                pl.BlockSpec((TK, NP), lambda i, k: (k, 0)),
                pl.BlockSpec((1, NP), lambda i, k: (0, 0)),
                pl.BlockSpec((TB, 1), lambda i, k: (i, 0)),
            ],
            out_specs=pl.BlockSpec((TB, NP), lambda i, k: (i, 0)),
            scratch_shapes=[pltpu.VMEM((TB, NP), jnp.float32)],
            compiler_params=pltpu.CompilerParams(
                dimension_semantics=("parallel", "arbitrary"),
                vmem_limit_bytes=vmem_limit),
        )(x2d, w_pad, b_pad, y2d)

    prediction = out[:, :N].astype(jnp.float32)   # logits
    loss = out[:, N].astype(jnp.float32)          # per-example CE loss in lane N
    return {"prediction": prediction, "loss": loss}


if __name__ == "__main__":
    # Small shapes consistent with the wrapper's image-classification use case.
    B, C, H, W = 2, 4, 16, 16
    NUM_CLASSES = 10
    D = C * H * W

    key = jax.random.PRNGKey(0)
    kx, kw, kb, ky = jax.random.split(key, 4)

    x = jax.random.normal(kx, (B, C, H, W), dtype=jnp.float32)
    y = jax.random.randint(ky, (B,), 0, NUM_CLASSES, dtype=jnp.int32)

    # deterministic "dataset" normalization stats (per channel)
    mean_c = jnp.array([0.485, 0.456, 0.406, 0.5], dtype=jnp.float32)
    std_c = jnp.array([0.229, 0.224, 0.225, 0.25], dtype=jnp.float32)

    # deterministic inner-model parameters (linear classifier)
    w = jax.random.normal(kw, (D, NUM_CLASSES), dtype=jnp.float32) * 0.02
    b = jax.random.normal(kb, (NUM_CLASSES,), dtype=jnp.float32) * 0.01

    fwd = jax.jit(top_level_model_wrapper_forward)
    out = fwd(x, y, mean_c, std_c, w, b)
    jax.block_until_ready(out)

    # pure-JAX f32 reference of the original module semantics
    xn_ref = (x - mean_c.reshape(1, C, 1, 1)) * (1.0 / std_c).reshape(1, C, 1, 1)
    logits_ref = xn_ref.reshape(B, D) @ w + b
    logp_ref = jax.nn.log_softmax(logits_ref, axis=-1)
    loss_ref = -jnp.take_along_axis(logp_ref, y[:, None], axis=-1)[:, 0]

    assert out["prediction"].shape == (B, NUM_CLASSES)
    assert out["loss"].shape == (B,)
    # tolerance covers bf16 rounding of x/W' over the D=1024 reduction plus the
    # bf16 packed-output store
    assert jnp.allclose(out["prediction"], logits_ref, atol=0.15, rtol=0.05), (
        "prediction mismatch: max abs diff "
        f"{float(jnp.max(jnp.abs(out['prediction'] - logits_ref)))}")
    assert jnp.allclose(out["loss"], loss_ref, atol=0.15, rtol=0.05), (
        "loss mismatch: max abs diff "
        f"{float(jnp.max(jnp.abs(out['loss'] - loss_ref)))}")

    print("KERNEL_OK")
</pallas_src>

<mosaic_0001>
module attributes {stable_mosaic.version = 11 : i64} {
  func.func @_kernel_single(%arg0: i32, %arg1: memref<2x1024xf32, #tpu.memory_space<vmem>>, %arg2: memref<1024x128xbf16, #tpu.memory_space<vmem>>, %arg3: memref<1x128xf32, #tpu.memory_space<vmem>>, %arg4: memref<2x1xi32, #tpu.memory_space<vmem>>, %arg5: memref<2x128xbf16, #tpu.memory_space<vmem>>) attributes {dimension_semantics = [#tpu.dimension_semantics<parallel>], iteration_bounds = array<i64: 1>, scalar_prefetch = 0 : i64, scratch_operands = 0 : i64, tpu.core_type = #tpu.core_type<tc>, window_params = [{transform_indices = @transform_0, window_bounds = array<i64: 2, 1024>}, {pipeline_mode = #tpu.pipeline_mode<synchronous>, transform_indices = @transform_1, window_bounds = array<i64: 1024, 128>}, {pipeline_mode = #tpu.pipeline_mode<synchronous>, transform_indices = @transform_2, window_bounds = array<i64: 1, 128>}, {transform_indices = @transform_3, window_bounds = array<i64: 2, 1>}, {transform_indices = @transform_4, window_bounds = array<i64: 2, 128>}]} {
    %c0 = arith.constant 0 : index
    %c0_0 = arith.constant 0 : index
    %0 = vector.load %arg1[%c0, %c0_0] : memref<2x1024xf32, #tpu.memory_space<vmem>>, vector<2x1024xf32>
    %1 = arith.truncf %0 : vector<2x1024xf32> to vector<2x1024xbf16>
    %c0_1 = arith.constant 0 : index
    %c0_2 = arith.constant 0 : index
    %2 = vector.load %arg2[%c0_1, %c0_2] : memref<1024x128xbf16, #tpu.memory_space<vmem>>, vector<1024x128xbf16>
    %cst = arith.constant dense<0.000000e+00> : vector<2x128xf32>
    %3 = tpu.matmul %1, %2, %cst {dimension_numbers = #tpu.dot_dimension_numbers<[1], [0], [0], [1], [0, 0, 1, 1], [], []>} : vector<2x1024xbf16>, vector<1024x128xbf16>, vector<2x128xf32> -> vector<2x128xf32>
    %c0_3 = arith.constant 0 : index
    %c0_4 = arith.constant 0 : index
    %4 = vector.load %arg3[%c0_3, %c0_4] : memref<1x128xf32, #tpu.memory_space<vmem>>, vector<1x128xf32>
    %5 = vector.broadcast %4 : vector<1x128xf32> to vector<2x128xf32>
    %6 = arith.addf %3, %5 : vector<2x128xf32>
    %c0_5 = arith.constant 0 : index
    %c0_6 = arith.constant 0 : index
    %7 = vector.load %arg4[%c0_5, %c0_6] : memref<2x1xi32, #tpu.memory_space<vmem>>, vector<2x1xi32>
    %cst_7 = arith.constant dense<0xFF800000> : vector<2xf32>
    %8 = vector.multi_reduction <maximumf>, %6, %cst_7 [1] : vector<2x128xf32> to vector<2xf32>
    %9 = vector.shape_cast %8 : vector<2xf32> to vector<2x1xf32>
    %10 = vector.broadcast %9 : vector<2x1xf32> to vector<2x128xf32>
    %11 = arith.subf %6, %10 : vector<2x128xf32>
    %12 = math.exp %11 : vector<2x128xf32>
    %cst_8 = arith.constant dense<0.000000e+00> : vector<2xf32>
    %13 = vector.multi_reduction <add>, %12, %cst_8 [1] : vector<2x128xf32> to vector<2xf32>
    %14 = vector.shape_cast %13 : vector<2xf32> to vector<2x1xf32>
    %15 = math.log %14 : vector<2x1xf32>
    %16 = arith.addf %9, %15 : vector<2x1xf32>
    %17 = tpu.iota {dimensions = array<i32: 1>} : vector<2x128xi32>
    %18 = vector.broadcast %7 : vector<2x1xi32> to vector<2x128xi32>
    %19 = arith.cmpi eq, %17, %18 : vector<2x128xi32>
    %cst_9 = arith.constant 0.000000e+00 : f32
    %20 = vector.broadcast %cst_9 : f32 to vector<2x128xf32>
    %21 = arith.select %19, %6, %20 : vector<2x128xi1>, vector<2x128xf32>
    %cst_10 = arith.constant dense<0.000000e+00> : vector<2xf32>
    %22 = vector.multi_reduction <add>, %21, %cst_10 [1] : vector<2x128xf32> to vector<2xf32>
    %23 = vector.shape_cast %22 : vector<2xf32> to vector<2x1xf32>
    %24 = arith.subf %16, %23 : vector<2x1xf32>
    %c10_i32 = arith.constant 10 : i32
    %25 = vector.broadcast %c10_i32 : i32 to vector<2x128xi32>
    %26 = arith.cmpi eq, %17, %25 : vector<2x128xi32>
    %27 = vector.shape_cast %24 : vector<2x1xf32> to vector<2x1xf32>
    %28 = vector.broadcast %27 : vector<2x1xf32> to vector<2x128xf32>
    %29 = arith.select %26, %28, %6 : vector<2x128xi1>, vector<2x128xf32>
    %30 = arith.truncf %29 : vector<2x128xf32> to vector<2x128xbf16>
    %c0_11 = arith.constant 0 : index
    %c0_12 = arith.constant 0 : index
    %31 = vector.load %arg5[%c0_11, %c0_12] : memref<2x128xbf16, #tpu.memory_space<vmem>>, vector<2x128xbf16>
    tpu.vector_store %arg5[%c0_11, %c0_12], %30 {strides = array<i32>} : memref<2x128xbf16, #tpu.memory_space<vmem>>, vector<2x128xbf16>,
    return
  }
  func.func @transform_0(%arg0: i32) -> (i32, i32) {
    %c0_i32 = arith.constant 0 : i32
    %c0_i32_0 = arith.constant 0 : i32
    return %arg0, %c0_i32 : i32, i32
  }
  func.func @transform_1(%arg0: i32) -> (i32, i32) {
    %c0_i32 = arith.constant 0 : i32
    %c0_i32_0 = arith.constant 0 : i32
    %c0_i32_1 = arith.constant 0 : i32
    return %c0_i32, %c0_i32_0 : i32, i32
  }
  func.func @transform_2(%arg0: i32) -> (i32, i32) {
    %c0_i32 = arith.constant 0 : i32
    %c0_i32_0 = arith.constant 0 : i32
    %c0_i32_1 = arith.constant 0 : i32
    return %c0_i32, %c0_i32_0 : i32, i32
  }
  func.func @transform_3(%arg0: i32) -> (i32, i32) {
    %c0_i32 = arith.constant 0 : i32
    %c0_i32_0 = arith.constant 0 : i32
    return %arg0, %c0_i32 : i32, i32
  }
  func.func @transform_4(%arg0: i32) -> (i32, i32) {
    %c0_i32 = arith.constant 0 : i32
    %c0_i32_0 = arith.constant 0 : i32
    return %arg0, %c0_i32 : i32, i32
  }
}

</mosaic_0001>

<bundles_post_ra>
// kernel: mul.9
= control target key start
LH: loop header
LB: loop body
LE: loop exit
PB: predicated region body
PF: predicated region fallthrough
CT: control target
= control target key end

     0   :  { %s34_s0 = inlined_call_operand.vmem [shape: f32[1024], index: 0, kind: input, shape index: {}]   ;;  %s35_s1 = inlined_call_operand.vmem [shape: f32[1024], index: 1, kind: input, shape index: {}]   ;;  %s36_s2 = inlined_call_operand.vmem [shape: f32[1024], index: 2, kind: output, shape index: {}]  }
   0x1   :  { %v3_v0 = vld [vmem:[%s34_s0] sm:$0xff] }
   0x2   :  { %v4_v1 = vld [vmem:[%s35_s1] sm:$0xff] }
   0x3   :  { %v7_v2 = vmul.f32 %v4_v1, %v3_v0 }
   0x5   :  { %9 = vst [vmem:[%s36_s2] sm:$0xff] %v7_v2 }

// kernel: top_level_model_wrapper_forward.1
= control target key start
LH: loop header
LB: loop body
LE: loop exit
PB: predicated region body
PF: predicated region fallthrough
CT: control target
= control target key end

     0   :  { %v1010_v22 = vmov 1983009808   ;;  %v26_v24 = vlaneseq  ;;  %vm752_vm0 = vcmask 1041408   ;;  %s1261_s1 = inlined_call_operand.vmem [shape: bf16[1024,128], index: 1, kind: input, shape index: {}]   ;;  %s1262_s0 = inlined_call_operand.vmem [shape: f32[2,1024], index: 0, kind: input, shape index: {}]   ;;  %s1263_s2 = inlined_call_operand.vmem [shape: f32[1,128], index: 2, kind: input, shape index: {}]   ;;  %s1264_s3 = inlined_call_operand.vmem [shape: s32[2,1], index: 3, kind: input, shape index: {}]   ;;  %s1265_s4 = inlined_call_operand.vmem [shape: bf16[2,128], index: 4, kind: output, shape index: {}]  }
   0x1   :  { %v940_v0 = vld [vmem:[%s1261_s1 + $0x40] sm:$0xff]   ;;  %v944_v4 = vld [vmem:[%s1261_s1 + $0x48] sm:$0xff]   ;;  %v948_v8 = vld [vmem:[%s1261_s1 + $0x50] sm:$0xff]   ;;  %v24_v23 = vunpack.c.l.s4 %v1010_v22 }
   0x2   :  { %v941_v1 = vld [vmem:[%s1261_s1 + $0xc0] sm:$0xff]   ;;  %849 = vmatprep.subr.bf16.mxu0 %v940_v0  ;;  %v945_v5 = vld [vmem:[%s1261_s1 + $0xc8] sm:$0xff]   ;;  %v949_v9 = vld [vmem:[%s1261_s1 + $0xd0] sm:$0xff]   ;;  %v27_v30 = vshrl.u32 %v26_v24, 7 }
   0x3   :  { %v942_v2 = vld [vmem:[%s1261_s1] sm:$0xff]   ;;  %871 = vmatprep.subr.bf16.mxu1 %v941_v1  ;;  %v946_v6 = vld [vmem:[%s1261_s1 + $0x8] sm:$0xff]   ;;  %v950_v10 = vld [vmem:[%s1261_s1 + $0x10] sm:$0xff]   ;;  %v25_v29 = vunpack.c.0.s8 %v24_v23 }
   0x4   :  { %v943_v3 = vld [vmem:[%s1261_s1 + $0x80] sm:$0xff]   ;;  %850 = vmatpush3.bf16.msra.mxu0 %v942_v2  ;;  %v947_v7 = vld [vmem:[%s1261_s1 + $0x88] sm:$0xff]   ;;  %v951_v11 = vld [vmem:[%s1261_s1 + $0x90] sm:$0xff]  }
   0x5   :  { %872 = vmatpush3.bf16.msra.mxu1 %v943_v3  ;;  %851 = vmatprep.subr.bf16.mxu0 %v944_v4  ;;  %v952_v12 = vld [vmem:[%s1261_s1 + $0x58] sm:$0xff]   ;;  %v956_v16 = vld [vmem:[%s1261_s1 + $0x60] sm:$0xff]   ;;  %v960_v20 = vld [vmem:[%s1261_s1 + $0x68] sm:$0xff]   ;;  %v28_v35 = vsub.s32 %v25_v29, %v27_v30 }
   0x6   :  { %873 = vmatprep.subr.bf16.mxu1 %v945_v5  ;;  %v953_v13 = vld [vmem:[%s1261_s1 + $0xd8] sm:$0xff]   ;;  %v957_v17 = vld [vmem:[%s1261_s1 + $0xe0] sm:$0xff]   ;;  %v961_v21 = vld [vmem:[%s1261_s1 + $0xe8] sm:$0xff]  }
   0x7   :  { %v954_v14 = vld [vmem:[%s1261_s1 + $0x18] sm:$0xff]   ;;  %v958_v18 = vld [vmem:[%s1261_s1 + $0x20] sm:$0xff]   ;;  %v962_v25 = vld [vmem:[%s1261_s1 + $0x28] sm:$0xff]  }
   0x8   :  { %852 = vmatpush3.bf16.msra.mxu0 %v946_v6  ;;  %v955_v15 = vld [vmem:[%s1261_s1 + $0x98] sm:$0xff]   ;;  %v959_v19 = vld [vmem:[%s1261_s1 + $0xa0] sm:$0xff]   ;;  %v963_v26 = vld [vmem:[%s1261_s1 + $0xa8] sm:$0xff]  }
   0x9   :  { %874 = vmatpush3.bf16.msra.mxu1 %v947_v7  ;;  %853 = vmatprep.subr.bf16.mxu0 %v948_v8  ;;  %v964_v27 = vld [vmem:[%s1261_s1 + $0x70] sm:$0xff]   ;;  %v968_v33 = vld [vmem:[%s1261_s1 + $0x78] sm:$0xff]   ;;  %v18_v38 = vld [vmem:[%s1262_s0] sm:$0xff] }
   0xa   :  { %875 = vmatprep.subr.bf16.mxu1 %v949_v9  ;;  %v965_v28 = vld [vmem:[%s1261_s1 + $0xf0] sm:$0xff]   ;;  %v969_v34 = vld [vmem:[%s1261_s1 + $0xf8] sm:$0xff]   ;;  %v19_v39 = vld [vmem:[%s1262_s0 + $0x8] sm:$0xff]  ;;  %v29_v40 = vrot.slane %v18_v38, %v28_v35  ;;  %v22_v42 = vcombine.high %v18_v38, %v18_v38 }
   0xb   :  { %v966_v31 = vld [vmem:[%s1261_s1 + $0x30] sm:$0xff]   ;;  %v970_v36 = vld [vmem:[%s1261_s1 + $0x38] sm:$0xff]   ;;  %v39_v41 = vcombine.high %v19_v39, %v19_v39  ;;  %v974_v43 = vld [vmem:[%s1261_s1 + $0x140] sm:$0xff]   ;;  %v1143_v44 = vrot.slane %v19_v39, %v28_v35 }
   0xc   :  { %854 = vmatpush3.bf16.msra.mxu0 %v950_v10  ;;  %v967_v32 = vld [vmem:[%s1261_s1 + $0xb0] sm:$0xff]   ;;  %v971_v37 = vld [vmem:[%s1261_s1 + $0xb8] sm:$0xff]   ;;  %v975_v45 = vld [vmem:[%s1261_s1 + $0x1c0] sm:$0xff]   ;;  %v37_v46 = vcombine.high %v29_v40, %v29_v40  ;;  %v36_v47 = vrot.slane %v22_v42, %v28_v35  ;;  %v64_v49 = vpack.c.bf16 %v29_v40, %v29_v40 }
   0xd   :  { %876 = vmatpush3.bf16.msra.mxu1 %v951_v11  ;;  %855 = vmatprep.subr.bf16.mxu0 %v952_v12  ;;  %v54_v48 = vcombine.high %v1143_v44, %v1143_v44  ;;  %v1150_v50 = vrot.slane %v39_v41, %v28_v35  ;;  %v976_v53 = vld [vmem:[%s1261_s1 + $0x100] sm:$0xff]   ;;  %v978_v55 = vld [vmem:[%s1261_s1 + $0x148] sm:$0xff]   ;;  %v982_v63 = vld [vmem:[%s1261_s1 + $0x150] sm:$0xff]  }
   0xe   :  { %877 = vmatprep.subr.bf16.mxu1 %v953_v13  ;;  %v65_v51 = vpack.c.bf16 %v37_v46, %v37_v46  ;;  %v38_v52 = vcombine.high %v36_v47, %v36_v47  ;;  %v66_v54 = vpack.c.bf16 %v36_v47, %v36_v47  ;;  %v977_v58 = vld [vmem:[%s1261_s1 + $0x180] sm:$0xff]   ;;  %v979_v60 = vld [vmem:[%s1261_s1 + $0x1c8] sm:$0xff]   ;;  %v983_v1 = vld [vmem:[%s1261_s1 + $0x1d0] sm:$0xff]  }
   0xf   :  { %v55_v56 = vcombine.high %v1150_v50, %v1150_v50  ;;  %v69_v59 = vpack.c.bf16 %v54_v48, %v54_v48  ;;  %v980_v62 = vld [vmem:[%s1261_s1 + $0x108] sm:$0xff]   ;;  %v984_v2 = vld [vmem:[%s1261_s1 + $0x110] sm:$0xff]   ;;  %v986_v3 = vld [vmem:[%s1261_s1 + $0x158] sm:$0xff]  }
  0x10   :  { %856 = vmatpush3.bf16.msra.mxu0 %v954_v14  ;;  %623 = vmatprep.mubr.bf16.mxu0 %v65_v51  ;;  %v67_v57 = vpack.c.bf16 %v38_v52, %v38_v52  ;;  %v981_v0 = vld [vmem:[%s1261_s1 + $0x188] sm:$0xff]   ;;  %v985_v4 = vld [vmem:[%s1261_s1 + $0x190] sm:$0xff]   ;;  %v987_v5 = vld [vmem:[%s1261_s1 + $0x1d8] sm:$0xff]  }
  0x11   :  { %878 = vmatpush3.bf16.msra.mxu1 %v955_v15  ;;  %857 = vmatprep.subr.bf16.mxu0 %v956_v16  ;;  %v71_v61 = vpack.c.bf16 %v55_v56, %v55_v56  ;;  %v988_v6 = vld [vmem:[%s1261_s1 + $0x118] sm:$0xff]   ;;  %v990_v7 = vld [vmem:[%s1261_s1 + $0x160] sm:$0xff]   ;;  %v994_v11 = vld [vmem:[%s1261_s1 + $0x168] sm:$0xff]  }
  0x12   :  { %879 = vmatprep.subr.bf16.mxu1 %v957_v17  ;;  %663 = vmatprep.mubr.bf16.mxu1 %v67_v57  ;;  %v989_v8 = vld [vmem:[%s1261_s1 + $0x198] sm:$0xff]   ;;  %v991_v9 = vld [vmem:[%s1261_s1 + $0x1e0] sm:$0xff]   ;;  %v995_v13 = vld [vmem:[%s1261_s1 + $0x1e8] sm:$0xff]  }
  0x13   :  { %v992_v10 = vld [vmem:[%s1261_s1 + $0x120] sm:$0xff]   ;;  %v996_v14 = vld [vmem:[%s1261_s1 + $0x128] sm:$0xff]   ;;  %v998_v15 = vld [vmem:[%s1261_s1 + $0x170] sm:$0xff]  }
  0x14   :  { %858 = vmatpush3.bf16.msra.mxu0 %v958_v18  ;;  %v993_v12 = vld [vmem:[%s1261_s1 + $0x1a0] sm:$0xff]   ;;  %v997_v16 = vld [vmem:[%s1261_s1 + $0x1a8] sm:$0xff]   ;;  %v999_v17 = vld [vmem:[%s1261_s1 + $0x1f0] sm:$0xff]  }
  0x15   :  { %880 = vmatpush3.bf16.msra.mxu1 %v959_v19  ;;  %859 = vmatprep.subr.bf16.mxu0 %v960_v20  ;;  %v1000_v18 = vld [vmem:[%s1261_s1 + $0x130] sm:$0xff]   ;;  %v1002_v19 = vld [vmem:[%s1261_s1 + $0x178] sm:$0xff]   ;;  %v784_v29 = vld [vmem:[%s1263_s2] ss:$0 sm:$0xff] }
  0x16   :  { %881 = vmatprep.subr.bf16.mxu1 %v961_v21  ;;  %v1001_v20 = vld [vmem:[%s1261_s1 + $0x1b0] sm:$0xff]   ;;  %v1003_v21 = vld [vmem:[%s1261_s1 + $0x1f8] sm:$0xff]  }
  0x17   :  { %v1004_v22 = vld [vmem:[%s1261_s1 + $0x138] sm:$0xff]  }
  0x18   :  { %860 = vmatpush3.bf16.msra.mxu0 %v962_v25  ;;  %v1005_v23 = vld [vmem:[%s1261_s1 + $0x1b8] sm:$0xff]   ;;  %v68_v25 = vpack.c.bf16 %v1143_v44, %v1143_v44 }
  0x19   :  { %882 = vmatpush3.bf16.msra.mxu1 %v963_v26  ;;  %861 = vmatprep.subr.bf16.mxu0 %v964_v27  ;;  %v70_v26 = vpack.c.bf16 %v1150_v50, %v1150_v50  ;;  %v1011_v27 = vmov 0  }
  0x1a   :  { %883 = vmatprep.subr.bf16.mxu1 %v965_v28  ;;  %939 = vset.pattern.permute.xlu0 %v1011_v27 }
  0x1c   :  { %862 = vmatpush3.bf16.msra.mxu0 %v966_v31 }
  0x1d   :  { %884 = vmatpush3.bf16.msra.mxu1 %v967_v32  ;;  %863 = vmatprep.subr.bf16.mxu0 %v968_v33 }
  0x1e   :  { %885 = vmatprep.subr.bf16.mxu1 %v969_v34 }
  0x20   :  { %864 = vmatpush3.bf16.msra.mxu0 %v970_v36 }
  0x21   :  { %886 = vmatpush3.bf16.msra.mxu1 %v971_v37  ;;  %893 = vmatprep.subr.bf16.mxu0 %v974_v43 }
  0x22   :  { %915 = vmatprep.subr.bf16.mxu1 %v975_v45 }
  0x23   :  { %624 = vmatmul.mubr.bf16.vlgmr.msra.gmra.mrb[0].mxu0 %v64_v49 }
  0x24   :  { %894 = vmatpush3.bf16.msra.mxu0 %v976_v53  ;;  %664 = vmatmul.mubr.bf16.vlgmr.msra.gmra.mrb[0].mxu1 %v66_v54  ;;  %v751_v54 = vld [vmem:[%s1264_s3] sm:$0x3] }
  0x25   :  { %895 = vmatprep.subr.bf16.mxu0 %v978_v55  ;;  %916 = vmatpush3.bf16.msra.mxu1 %v977_v58  ;;  %v766_v58 = vand.u32 127, %v26_v24 }
  0x26   :  { %703 = vmatprep.mubr.bf16.mxu0 %v69_v59  ;;  %917 = vmatprep.subr.bf16.mxu1 %v979_v60 }
  0x27   :  { %743 = vmatprep.mubr.bf16.mxu1 %v71_v61  ;;  %vm776_vm2 = vcmp.eq.s32.totalorder %v766_v58, 10 }
  0x28   :  { %896 = vmatpush3.bf16.msra.mxu0 %v980_v62 }
  0x29   :  { %897 = vmatprep.subr.bf16.mxu0 %v982_v63  ;;  %918 = vmatpush3.bf16.msra.mxu1 %v981_v0 }
  0x2a   :  { %919 = vmatprep.subr.bf16.mxu1 %v983_v1 }
  0x2c   :  { %898 = vmatpush3.bf16.msra.mxu0 %v984_v2 }
  0x2d   :  { %899 = vmatprep.subr.bf16.mxu0 %v986_v3  ;;  %920 = vmatpush3.bf16.msra.mxu1 %v985_v4 }
  0x2e   :  { %921 = vmatprep.subr.bf16.mxu1 %v987_v5 }
  0x30   :  { %900 = vmatpush3.bf16.msra.mxu0 %v988_v6 }
  0x31   :  { %901 = vmatprep.subr.bf16.mxu0 %v990_v7  ;;  %922 = vmatpush3.bf16.msra.mxu1 %v989_v8 }
  0x32   :  { %923 = vmatprep.subr.bf16.mxu1 %v991_v9 }
  0x34   :  { %902 = vmatpush3.bf16.msra.mxu0 %v992_v10 }
  0x35   :  { %903 = vmatprep.subr.bf16.mxu0 %v994_v11  ;;  %924 = vmatpush3.bf16.msra.mxu1 %v993_v12 }
  0x36   :  { %925 = vmatprep.subr.bf16.mxu1 %v995_v13 }
  0x38   :  { %904 = vmatpush3.bf16.msra.mxu0 %v996_v14 }
  0x39   :  { %905 = vmatprep.subr.bf16.mxu0 %v998_v15  ;;  %926 = vmatpush3.bf16.msra.mxu1 %v997_v16 }
  0x3a   :  { %927 = vmatprep.subr.bf16.mxu1 %v999_v17 }
  0x3c   :  { %906 = vmatpush3.bf16.msra.mxu0 %v1000_v18 }
  0x3d   :  { %907 = vmatprep.subr.bf16.mxu0 %v1002_v19  ;;  %928 = vmatpush3.bf16.msra.mxu1 %v1001_v20 }
  0x3e   :  { %929 = vmatprep.subr.bf16.mxu1 %v1003_v21 }
  0x40   :  { %908 = vmatpush3.bf16.msra.mxu0 %v1004_v22 }
  0x41   :  { %930 = vmatpush3.bf16.msra.mxu1 %v1005_v23 }
  0x43   :  { %704 = vmatmul.mubr.bf16.vlgmr.msra.gmra.mrb[4].mxu0 %v68_v25 }
  0x44   :  { %744 = vmatmul.mubr.bf16.vlgmr.msra.gmra.mrb[4].mxu1 %v70_v26 }
  0xf6   :  { %v865_v28 = vpop.f32.mrb[0].mxu0 }
  0xf7   :  { %v866_v30 = vpop.f32.mrb[1].mxu0  ;;  %v887_v31 = vpop.f32.mrb[0].mxu1 }
  0xf8   :  { %v867_v32 = vadd.f32 %v866_v30, %v865_v28  ;;  %v868_v33 = vpop.f32.mrb[2].mxu0  ;;  %v888_v34 = vpop.f32.mrb[1].mxu1 }
  0xf9   :  { %v869_v35 = vpop.f32.mrb[3].mxu0  ;;  %v889_v37 = vadd.f32 %v888_v34, %v887_v31  ;;  %v890_v38 = vpop.f32.mrb[2].mxu1 }
  0xfa   :  { %v626_v36 = vadd.f32 %v867_v32, %v784_v29  ;;  %v891_v39 = vpop.f32.mrb[3].mxu1 }
  0xfc   :  { %v666_v40 = vadd.f32 %v889_v37, %v626_v36 }
 0x116   :  { %v909_v41 = vpop.f32.mrb[4].mxu0 }
 0x117   :  { %v910_v42 = vpop.f32.mrb[5].mxu0  ;;  %v931_v43 = vpop.f32.mrb[4].mxu1 }
 0x118   :  { %v911_v44 = vadd.f32 %v910_v42, %v909_v41  ;;  %v912_v45 = vpop.f32.mrb[6].mxu0  ;;  %v932_v46 = vpop.f32.mrb[5].mxu1 }
 0x119   :  { %v913_v47 = vpop.f32.mrb[7].mxu0  ;;  %v933_v49 = vadd.f32 %v932_v46, %v931_v43  ;;  %v934_v50 = vpop.f32.mrb[6].mxu1 }
 0x11a   :  { %v706_v48 = vadd.f32 %v911_v44, %v666_v40  ;;  %v935_v51 = vpop.f32.mrb[7].mxu1 }
 0x11c   :  { %v746_v52 = vadd.f32 %v933_v49, %v706_v48 }
 0x11e   :  { %v753_v53 = vsel %vm752_vm0, %v746_v52, -inf }
 0x11f   :  { %754 = vmax.xlane.f32.xlu0 %v753_v53 }
 0x135   :  { %768 = vperm.xlu0 %939, %v751_v54  }
 0x1ac   :  { %v755_v55 = vpop.xlane.xlu0 %754 }
 0x1ad   :  { %v756_v56 = vsub.f32 %v746_v52, %v755_v55 }
 0x1af   :  { %v757_v57 = vmul.f32 1.442695, %v756_v56 }
 0x1b1   :  { %1006 = vpow2.f32 %v757_v57 }
 0x1b4   :  { %v769_v59 = vpop.permute.xlu0 %768 }
 0x1b5   :  { %vm770_vm1 = vcmp.eq.s32.totalorder %v766_v58, %v769_v59 }
 0x1b6   :  { %v771_v62 = vsel %vm770_vm1, %v746_v52, 0.0 }
 0x1b7   :  { %v772_v63 = vsel %vm752_vm0, %v771_v62, 0.0 }
 0x1bb   :  { %v1007_v60 = vpop.eup %1006 }
 0x1bc   :  { %v759_v61 = vsel %vm752_vm0, %v1007_v60, 0.0 }
 0x1bd   :  { %760 = vadd.xlane.f32.xlu1 %v759_v61 }
 0x1c1   :  { %773 = vadd.xlane.f32.xlu1 %v772_v63 }
 0x24a   :  { %v761_v0 = vpop.xlane.xlu1 %760 }
 0x24b   :  { %1008 = vlog2.f32 %v761_v0 }
 0x24e   :  { %v774_v4 = vpop.xlane.xlu1 %773 }
 0x255   :  { %v1009_v1 = vpop.eup %1008 }
 0x256   :  { %v763_v2 = vmul.f32 0.6931472, %v1009_v1 }
 0x258   :  { %v764_v3 = vadd.f32 %v763_v2, %v755_v55 }
 0x25a   :  { %v775_v5 = vsub.f32 %v764_v3, %v774_v4 }
 0x25c   :  { %v777_v6 = vsel %vm776_vm2, %v775_v5, %v746_v52 }
 0x25d   :  { %v778_v24 = vpack.c.bf16 %v777_v6, %v777_v6 }
 0x25f   :  { %779 = vst [vmem:[%s1265_s4] sm:$0x1] %v778_v24 }

</bundles_post_ra>
